<compile_context>
chip_gen: v7x
topology: tpu7x:2x2x1
jax: 0.10.0
libtpu: 0.0.40
codegen_flags: <defaults>
</compile_context>

<pallas_src>
from functools import partial

import numpy as np
import jax
import jax.numpy as jnp
from jax.experimental import pallas as pl
from jax.experimental.pallas import tpu as pltpu


def _decode_kernel(pred_ref, add_ref, out_ref, *, rows_per_block, num_anchors,
                   stride_w, stride_h, anchor_w_scaled, anchor_h_scaled):
    """One grid step decodes `rows_per_block` (batch, anchor) rows."""
    attrs, hwp = add_ref.shape
    add = add_ref[...]                                        # (attrs, HWp) f32

    # Sublane-index masks (attr row 0..attrs-1), hoisted out of the row loop.
    attr = jax.lax.broadcasted_iota(jnp.int32, (attrs, hwp), 0)
    is_x = attr == 0
    is_y = attr == 1
    is_w = attr == 2
    is_h = attr == 3
    is_wh = is_w | is_h

    # rows_per_block % num_anchors == 0 (enforced by the wrapper), so the
    # anchor index of local row r is r % num_anchors regardless of program_id.
    for r in range(rows_per_block):
        a = r % num_anchors
        p = pred_ref[r].astype(jnp.float32)                   # (attrs, HWp), full vregs
        base = jnp.where(is_wh, jnp.exp(p), jax.nn.sigmoid(p))
        mult = jnp.where(is_x, stride_w,
               jnp.where(is_y, stride_h,
               jnp.where(is_w, anchor_w_scaled[a],
               jnp.where(is_h, anchor_h_scaled[a], 1.0))))
        # rows 0/1: (sigmoid + grid) * stride ; rows 2/3: exp * (anchor*stride)
        # rows 4+ : sigmoid
        out_ref[r] = ((base + add) * mult).astype(out_ref.dtype)


def decode_box(inp, anchors, num_classes, img_size, *, torch_layout=True):
    """JAX/Pallas equivalent of DecodeBox.forward.

    inp: (B, A*(5+num_classes), H, W), any float dtype (native backbone dtype).
    torch_layout=True  -> (B, A*H*W, 5+num_classes) float32 (torch-compatible).
    torch_layout=False -> (B*A, 5+num_classes, HW) float32, the kernel's
      lane-dense layout; prefer it when the consumer (NMS / filtering) can be
      fused on it, avoiding an extra HBM transpose pass.
    """
    B, C, H, W = inp.shape
    A = len(anchors)
    attrs = 5 + num_classes
    assert C == A * attrs, "channel dim must equal num_anchors*(5+num_classes)"

    stride_h = img_size[1] / H
    stride_w = img_size[0] / W
    HW = H * W
    HW_pad = ((HW + 127) // 128) * 128        # lane-dense, unmasked stores

    # Keep the native dtype (no host-side f32 cast); kernel upcasts in VMEM.
    pred = inp.reshape(B * A, attrs, HW)
    if HW_pad != HW:
        pred = jnp.pad(pred, ((0, 0), (0, 0), (0, HW_pad - HW)))

    # Single small constant operand: row 0 holds grid_x, row 1 grid_y, rest 0.
    add_np = np.zeros((attrs, HW_pad), dtype=np.float32)
    add_np[0, :HW] = np.tile(np.arange(W, dtype=np.float32)[None, :], (H, 1)).reshape(-1)
    add_np[1, :HW] = np.tile(np.arange(H, dtype=np.float32)[:, None], (1, W)).reshape(-1)
    add_term = jnp.asarray(add_np)

    # Compile-time anchor multipliers (scaled anchor * stride) -> VPU immediates.
    scaled = np.asarray(anchors, dtype=np.float32) / np.asarray(
        [stride_w, stride_h], dtype=np.float32)
    aw_sw = tuple(float(np.float32(scaled[a, 0]) * np.float32(stride_w)) for a in range(A))
    ah_sh = tuple(float(np.float32(scaled[a, 1]) * np.float32(stride_h)) for a in range(A))

    rows = B * A
    # 2 parallel steps so v7x's two TensorCores each take half the rows;
    # on v5e/v6e the extra step costs ~one pipeline bubble only.
    num_steps = 2 if (B % 2 == 0 and B >= 2) else 1
    rows_per_block = rows // num_steps        # divisible by A by construction

    kernel = partial(_decode_kernel,
                     rows_per_block=rows_per_block, num_anchors=A,
                     stride_w=float(stride_w), stride_h=float(stride_h),
                     anchor_w_scaled=aw_sw, anchor_h_scaled=ah_sh)

    n = rows * attrs * HW_pad
    cost = pl.CostEstimate(
        flops=8 * n,
        transcendentals=3 * n,
        bytes_accessed=int(pred.size) * pred.dtype.itemsize
        + int(add_term.size) * 4 + n * 4)

    out = pl.pallas_call(
        kernel,
        out_shape=jax.ShapeDtypeStruct((rows, attrs, HW_pad), jnp.float32),
        grid=(num_steps,),
        in_specs=[
            pl.BlockSpec((rows_per_block, attrs, HW_pad), lambda i: (i, 0, 0)),
            pl.BlockSpec((attrs, HW_pad), lambda i: (0, 0)),
        ],
        out_specs=pl.BlockSpec((rows_per_block, attrs, HW_pad), lambda i: (i, 0, 0)),
        compiler_params=pltpu.CompilerParams(
            dimension_semantics=("parallel",)),
        cost_estimate=cost,
    )(pred, add_term)

    if HW_pad != HW:
        out = out[:, :, :HW]
    if not torch_layout:
        return out
    # torch-compatible layout (extra HBM pass; fuse into the consumer when possible)
    out = out.reshape(B, A, attrs, HW).transpose(0, 1, 3, 2)
    return out.reshape(B, A * HW, attrs)


def _decode_box_reference(inp, anchors, num_classes, img_size):
    """Pure-numpy reference mirroring the PyTorch DecodeBox.forward."""
    inp = np.asarray(inp, dtype=np.float32)
    B, C, H, W = inp.shape
    A = len(anchors)
    attrs = 5 + num_classes
    stride_h = img_size[1] / H
    stride_w = img_size[0] / W

    pred = inp.reshape(B, A, attrs, H, W).transpose(0, 1, 3, 4, 2)  # B,A,H,W,attrs
    sig = lambda z: 1.0 / (1.0 + np.exp(-z))
    x = sig(pred[..., 0]); y = sig(pred[..., 1])
    w = pred[..., 2]; h = pred[..., 3]
    conf = sig(pred[..., 4]); cls = sig(pred[..., 5:])

    grid_x = np.tile(np.arange(W, dtype=np.float32)[None, :], (H, 1))
    grid_y = np.tile(np.arange(H, dtype=np.float32)[:, None], (1, W))
    scaled = np.asarray(anchors, dtype=np.float32) / np.asarray(
        [stride_w, stride_h], dtype=np.float32)
    aw = scaled[:, 0][None, :, None, None]
    ah = scaled[:, 1][None, :, None, None]

    boxes = np.empty(pred[..., :4].shape, dtype=np.float32)
    boxes[..., 0] = x + grid_x
    boxes[..., 1] = y + grid_y
    boxes[..., 2] = np.exp(w) * aw
    boxes[..., 3] = np.exp(h) * ah
    scale = np.array([stride_w, stride_h, stride_w, stride_h], dtype=np.float32)

    return np.concatenate(
        [boxes.reshape(B, -1, 4) * scale,
         conf.reshape(B, -1, 1),
         cls.reshape(B, -1, num_classes)], axis=-1)


if __name__ == "__main__":
    num_classes = 3
    attrs = 5 + num_classes            # = 8

    # --- config 1: aligned H*W (16*16 = 256 lanes), f32 input -------------
    anchors = [(10.0, 13.0), (16.0, 30.0), (33.0, 23.0)]
    img_size = (64, 64)                # (img_w, img_h)
    B, H, W = 2, 16, 16
    A = len(anchors)

    key = jax.random.PRNGKey(0)
    k1, k2 = jax.random.split(key)
    x = jax.random.normal(k1, (B, A * attrs, H, W), dtype=jnp.float32)

    out = jax.block_until_ready(decode_box(x, anchors, num_classes, img_size))
    ref = _decode_box_reference(np.asarray(x), anchors, num_classes, img_size)
    np.testing.assert_allclose(np.asarray(out), ref, rtol=1e-5, atol=1e-5)

    # --- config 1 with native bf16 input (kernel upcasts to f32 in VMEM) --
    x_bf16 = x.astype(jnp.bfloat16)
    out_bf = jax.block_until_ready(decode_box(x_bf16, anchors, num_classes, img_size))
    ref_bf = _decode_box_reference(np.asarray(x_bf16.astype(jnp.float32)),
                                   anchors, num_classes, img_size)
    np.testing.assert_allclose(np.asarray(out_bf), ref_bf, rtol=1e-4, atol=1e-4)

    # --- config 2: ragged H*W (13*13 = 169 -> padded to 256 lanes) --------
    anchors2 = [(116.0, 90.0), (156.0, 198.0), (373.0, 326.0)]
    img_size2 = (416, 416)
    B2, H2, W2 = 2, 13, 13
    x2 = jax.random.normal(k2, (B2, len(anchors2) * attrs, H2, W2), dtype=jnp.float32)

    out2 = jax.block_until_ready(decode_box(x2, anchors2, num_classes, img_size2))
    ref2 = _decode_box_reference(np.asarray(x2), anchors2, num_classes, img_size2)
    np.testing.assert_allclose(np.asarray(out2), ref2, rtol=1e-4, atol=1e-4)

    print("KERNEL_OK")
</pallas_src>

<mosaic_0001>
module attributes {stable_mosaic.version = 11 : i64} {
  func.func @_decode_kernel(%arg0: i32, %arg1: memref<3x8x256xf32, #tpu.memory_space<vmem>>, %arg2: memref<8x256xf32, #tpu.memory_space<vmem>>, %arg3: memref<3x8x256xf32, #tpu.memory_space<vmem>>) attributes {dimension_semantics = [#tpu.dimension_semantics<parallel>], iteration_bounds = array<i64: 2>, scalar_prefetch = 0 : i64, scratch_operands = 0 : i64, tpu.core_type = #tpu.core_type<tc>, window_params = [{transform_indices = @transform_0, window_bounds = array<i64: 3, 8, 256>}, {pipeline_mode = #tpu.pipeline_mode<synchronous>, transform_indices = @transform_1, window_bounds = array<i64: 8, 256>}, {transform_indices = @transform_2, window_bounds = array<i64: 3, 8, 256>}]} {
    %c0 = arith.constant 0 : index
    %c0_0 = arith.constant 0 : index
    %0 = vector.load %arg2[%c0, %c0_0] : memref<8x256xf32, #tpu.memory_space<vmem>>, vector<8x256xf32>
    %1 = tpu.iota {dimensions = array<i32: 0>} : vector<8x256xi32>
    %c0_i32 = arith.constant 0 : i32
    %2 = vector.broadcast %c0_i32 : i32 to vector<8x256xi32>
    %3 = arith.cmpi eq, %1, %2 : vector<8x256xi32>
    %c1_i32 = arith.constant 1 : i32
    %4 = vector.broadcast %c1_i32 : i32 to vector<8x256xi32>
    %5 = arith.cmpi eq, %1, %4 : vector<8x256xi32>
    %c2_i32 = arith.constant 2 : i32
    %6 = vector.broadcast %c2_i32 : i32 to vector<8x256xi32>
    %7 = arith.cmpi eq, %1, %6 : vector<8x256xi32>
    %c3_i32 = arith.constant 3 : i32
    %8 = vector.broadcast %c3_i32 : i32 to vector<8x256xi32>
    %9 = arith.cmpi eq, %1, %8 : vector<8x256xi32>
    %10 = arith.ori %7, %9 : vector<8x256xi1>
    %c0_1 = arith.constant 0 : index
    %c0_2 = arith.constant 0 : index
    %c0_3 = arith.constant 0 : index
    %11 = vector.load %arg1[%c0_1, %c0_2, %c0_3] : memref<3x8x256xf32, #tpu.memory_space<vmem>>, vector<1x8x256xf32>
    %12 = vector.shape_cast %11 : vector<1x8x256xf32> to vector<8x256xf32>
    %13 = math.exp %12 : vector<8x256xf32>
    %14 = arith.negf %12 : vector<8x256xf32>
    %15 = math.exp %14 : vector<8x256xf32>
    %cst = arith.constant 1.000000e+00 : f32
    %16 = vector.broadcast %cst : f32 to vector<8x256xf32>
    %17 = arith.addf %16, %15 : vector<8x256xf32>
    %18 = arith.divf %16, %17 : vector<8x256xf32>
    %19 = arith.select %10, %13, %18 : vector<8x256xi1>, vector<8x256xf32>
    %cst_4 = arith.constant 1.300000e+01 : f32
    %cst_5 = arith.constant 1.000000e+00 : f32
    %20 = vector.broadcast %cst_4 : f32 to vector<8x256xf32>
    %21 = vector.broadcast %cst_5 : f32 to vector<8x256xf32>
    %22 = arith.select %9, %20, %21 : vector<8x256xi1>, vector<8x256xf32>
    %cst_6 = arith.constant 1.000000e+01 : f32
    %23 = vector.broadcast %cst_6 : f32 to vector<8x256xf32>
    %24 = arith.select %7, %23, %22 : vector<8x256xi1>, vector<8x256xf32>
    %cst_7 = arith.constant 4.000000e+00 : f32
    %25 = vector.broadcast %cst_7 : f32 to vector<8x256xf32>
    %26 = arith.select %5, %25, %24 : vector<8x256xi1>, vector<8x256xf32>
    %cst_8 = arith.constant 4.000000e+00 : f32
    %27 = vector.broadcast %cst_8 : f32 to vector<8x256xf32>
    %28 = arith.select %3, %27, %26 : vector<8x256xi1>, vector<8x256xf32>
    %29 = arith.addf %19, %0 : vector<8x256xf32>
    %30 = arith.mulf %29, %28 : vector<8x256xf32>
    %c0_9 = arith.constant 0 : index
    %c0_10 = arith.constant 0 : index
    %c0_11 = arith.constant 0 : index
    %31 = vector.load %arg3[%c0_9, %c0_10, %c0_11] : memref<3x8x256xf32, #tpu.memory_space<vmem>>, vector<1x8x256xf32>
    %32 = vector.shape_cast %31 : vector<1x8x256xf32> to vector<8x256xf32>
    %33 = vector.shape_cast %30 : vector<8x256xf32> to vector<1x8x256xf32>
    tpu.vector_store %arg3[%c0_9, %c0_10, %c0_11], %33 {strides = array<i32>} : memref<3x8x256xf32, #tpu.memory_space<vmem>>, vector<1x8x256xf32>,
    %c1 = arith.constant 1 : index
    %c0_12 = arith.constant 0 : index
    %c0_13 = arith.constant 0 : index
    %34 = vector.load %arg1[%c1, %c0_12, %c0_13] : memref<3x8x256xf32, #tpu.memory_space<vmem>>, vector<1x8x256xf32>
    %35 = vector.shape_cast %34 : vector<1x8x256xf32> to vector<8x256xf32>
    %36 = math.exp %35 : vector<8x256xf32>
    %37 = arith.negf %35 : vector<8x256xf32>
    %38 = math.exp %37 : vector<8x256xf32>
    %cst_14 = arith.constant 1.000000e+00 : f32
    %39 = vector.broadcast %cst_14 : f32 to vector<8x256xf32>
    %40 = arith.addf %39, %38 : vector<8x256xf32>
    %41 = arith.divf %39, %40 : vector<8x256xf32>
    %42 = arith.select %10, %36, %41 : vector<8x256xi1>, vector<8x256xf32>
    %cst_15 = arith.constant 3.000000e+01 : f32
    %cst_16 = arith.constant 1.000000e+00 : f32
    %43 = vector.broadcast %cst_15 : f32 to vector<8x256xf32>
    %44 = vector.broadcast %cst_16 : f32 to vector<8x256xf32>
    %45 = arith.select %9, %43, %44 : vector<8x256xi1>, vector<8x256xf32>
    %cst_17 = arith.constant 1.600000e+01 : f32
    %46 = vector.broadcast %cst_17 : f32 to vector<8x256xf32>
    %47 = arith.select %7, %46, %45 : vector<8x256xi1>, vector<8x256xf32>
    %cst_18 = arith.constant 4.000000e+00 : f32
    %48 = vector.broadcast %cst_18 : f32 to vector<8x256xf32>
    %49 = arith.select %5, %48, %47 : vector<8x256xi1>, vector<8x256xf32>
    %cst_19 = arith.constant 4.000000e+00 : f32
    %50 = vector.broadcast %cst_19 : f32 to vector<8x256xf32>
    %51 = arith.select %3, %50, %49 : vector<8x256xi1>, vector<8x256xf32>
    %52 = arith.addf %42, %0 : vector<8x256xf32>
    %53 = arith.mulf %52, %51 : vector<8x256xf32>
    %c1_20 = arith.constant 1 : index
    %c0_21 = arith.constant 0 : index
    %c0_22 = arith.constant 0 : index
    %54 = vector.load %arg3[%c1_20, %c0_21, %c0_22] : memref<3x8x256xf32, #tpu.memory_space<vmem>>, vector<1x8x256xf32>
    %55 = vector.shape_cast %54 : vector<1x8x256xf32> to vector<8x256xf32>
    %56 = vector.shape_cast %53 : vector<8x256xf32> to vector<1x8x256xf32>
    tpu.vector_store %arg3[%c1_20, %c0_21, %c0_22], %56 {strides = array<i32>} : memref<3x8x256xf32, #tpu.memory_space<vmem>>, vector<1x8x256xf32>,
    %c2 = arith.constant 2 : index
    %c0_23 = arith.constant 0 : index
    %c0_24 = arith.constant 0 : index
    %57 = vector.load %arg1[%c2, %c0_23, %c0_24] : memref<3x8x256xf32, #tpu.memory_space<vmem>>, vector<1x8x256xf32>
    %58 = vector.shape_cast %57 : vector<1x8x256xf32> to vector<8x256xf32>
    %59 = math.exp %58 : vector<8x256xf32>
    %60 = arith.negf %58 : vector<8x256xf32>
    %61 = math.exp %60 : vector<8x256xf32>
    %cst_25 = arith.constant 1.000000e+00 : f32
    %62 = vector.broadcast %cst_25 : f32 to vector<8x256xf32>
    %63 = arith.addf %62, %61 : vector<8x256xf32>
    %64 = arith.divf %62, %63 : vector<8x256xf32>
    %65 = arith.select %10, %59, %64 : vector<8x256xi1>, vector<8x256xf32>
    %cst_26 = arith.constant 2.300000e+01 : f32
    %cst_27 = arith.constant 1.000000e+00 : f32
    %66 = vector.broadcast %cst_26 : f32 to vector<8x256xf32>
    %67 = vector.broadcast %cst_27 : f32 to vector<8x256xf32>
    %68 = arith.select %9, %66, %67 : vector<8x256xi1>, vector<8x256xf32>
    %cst_28 = arith.constant 3.300000e+01 : f32
    %69 = vector.broadcast %cst_28 : f32 to vector<8x256xf32>
    %70 = arith.select %7, %69, %68 : vector<8x256xi1>, vector<8x256xf32>
    %cst_29 = arith.constant 4.000000e+00 : f32
    %71 = vector.broadcast %cst_29 : f32 to vector<8x256xf32>
    %72 = arith.select %5, %71, %70 : vector<8x256xi1>, vector<8x256xf32>
    %cst_30 = arith.constant 4.000000e+00 : f32
    %73 = vector.broadcast %cst_30 : f32 to vector<8x256xf32>
    %74 = arith.select %3, %73, %72 : vector<8x256xi1>, vector<8x256xf32>
    %75 = arith.addf %65, %0 : vector<8x256xf32>
    %76 = arith.mulf %75, %74 : vector<8x256xf32>
    %c2_31 = arith.constant 2 : index
    %c0_32 = arith.constant 0 : index
    %c0_33 = arith.constant 0 : index
    %77 = vector.load %arg3[%c2_31, %c0_32, %c0_33] : memref<3x8x256xf32, #tpu.memory_space<vmem>>, vector<1x8x256xf32>
    %78 = vector.shape_cast %77 : vector<1x8x256xf32> to vector<8x256xf32>
    %79 = vector.shape_cast %76 : vector<8x256xf32> to vector<1x8x256xf32>
    tpu.vector_store %arg3[%c2_31, %c0_32, %c0_33], %79 {strides = array<i32>} : memref<3x8x256xf32, #tpu.memory_space<vmem>>, vector<1x8x256xf32>,
    return
  }
  func.func @transform_0(%arg0: i32) -> (i32, i32, i32) {
    %c0_i32 = arith.constant 0 : i32
    %c0_i32_0 = arith.constant 0 : i32
    %c0_i32_1 = arith.constant 0 : i32
    return %arg0, %c0_i32, %c0_i32_0 : i32, i32, i32
  }
  func.func @transform_1(%arg0: i32) -> (i32, i32) {
    %c0_i32 = arith.constant 0 : i32
    %c0_i32_0 = arith.constant 0 : i32
    %c0_i32_1 = arith.constant 0 : i32
    return %c0_i32, %c0_i32_0 : i32, i32
  }
  func.func @transform_2(%arg0: i32) -> (i32, i32, i32) {
    %c0_i32 = arith.constant 0 : i32
    %c0_i32_0 = arith.constant 0 : i32
    %c0_i32_1 = arith.constant 0 : i32
    return %arg0, %c0_i32, %c0_i32_0 : i32, i32, i32
  }
}

</mosaic_0001>

<bundles_post_ra>
// kernel: tpu_custom_call.1
= control target key start
LH: loop header
LB: loop body
LE: loop exit
PB: predicated region body
PF: predicated region fallthrough
CT: control target
= control target key end

     0   :  { %7 = vsyncpa [#allocation3], 0  ;;  %s916_s0 = inlined_call_operand.hbm [shape: f32[6,8,256], index: 0, kind: input, shape index: {}]   ;;  %s917_s1 = inlined_call_operand.hbm [shape: f32[8,256], index: 1, kind: input, shape index: {}]   ;;  %s918_s2 = inlined_call_operand.hbm [shape: f32[6,8,256], index: 2, kind: output, shape index: {}]  }
   0x1   :  { %9 = vsyncpa [#allocation3 + $0x1], 0 }
   0x2   :  { %10 = vsyncpa [#allocation6], 0 }
   0x3   :  { %11 = vsyncpa [#allocation4], 0 }
   0x4   :  { %13 = vsyncpa [#allocation4 + $0x1], 0  ;;  %s664_s9 = smov 0   ;;  %s666_s10 = smov 0  }
   0x5   :  { %s668_s11 = smov 0   ;;  %s670_s12 = smov 0  }
   0x6 LB: > { %s685_s13 = sadd.s32 4294967295, %s639_s12   ;;  %s379_s14 = sadd.s32 4294967294, %s639_s12   ;;  %s639_s12 = sphi %s670_s12, %s945_s12   ;;  %s635_s11 = sphi %s668_s11, %s944_s11   ;;  %s631_s10 = sphi %s666_s10, %s943_s10   ;;  %s627_s9 = sphi %s664_s9, %s942_s9  }
   0x7   : > { %s689_s15 = sadd.s32 1, %s639_s12   ;;  %s26_s16 = sadd.s32 1, %s635_s11 }
   0x8   : > { %s23_s17 = ssub.s32 %s639_s12, %s689_s15  ;;  %p33_p0 = scmp.ne.s32.totalorder %s635_s11, %s631_s10 }
   0x9   : > { %p24_p1 = scmp.eq.s32.totalorder %s23_s17, 0  ;;  %p34_p2 = scmp.eq.s32.totalorder %s639_s12, 0 }
   0xa   : > { %p39_p3 = scmp.ne.s32.totalorder %s631_s10, %s627_s9  ;;  %p919_p4 = scmp.eq.s32.totalorder %s685_s13, 0 }
   0xb   : > { %s701_s18 = scalar_select %p24_p1, %s635_s11, %s26_s16  }
   0xc   : > { %p703_p5 = por %p34_p2, %p33_p0  ;;  %p709_p6 = por %p919_p4, %p39_p3 }
   0xd   : > { %p84_p7 = scmp.eq.s32.totalorder %s685_s13, 1  ;;  %p90_p8 = scmp.eq.s32.totalorder %s379_s14, 1 }
   0xe   : > { %s925_s20 = scalar_select %p709_p6, 1, 0 }
   0xf   : > { %p380_p9 = scmp.ge.s32.totalorder %s639_s12, 1  ;;  %p97_p10 = scmp.lt.s32.totalorder %s639_s12, 3 }
  0x10   : > { %p716_p11 = por %p84_p7, %p33_p0  ;;  %p720_p12 = por %p90_p8, %p39_p3 }
  0x11   : > { %p724_p13 = pnand %p380_p9, %p97_p10  ;;  %s641_s24 = smov [#allocation5]  }
  0x12   : > { %s926_s21 = scalar_select %p716_p11, 1, 0 }
  0x13   : > { %s927_s22 = scalar_select %p720_p12, 1, 0 }
  0x14   : > { %s928_s23 = scalar_select %p724_p13, 1, 0 }
  0x15   : > { %p421_p2 = pneg %p724_p13  ;;  %s110_s25 = sshll.u32 %s641_s24, 4  ;;  %s111_s25 = int_to_ptr.vmem [resolvable:$true] %s110_s25 }
  0x16   : > { %p434_p4 = scmp.lt.s32.totalorder %s639_s12, 2  ;;  %p929_p0 = scmp.eq.s32.totalorder %s685_s13, 0 }
  0x17   : > { %s121_s27 = sand.u32 1, %s635_s11   ;;  %s511_s4 = scalar_lea.hbm %s917_s1, 256 }
  0x18   : > { %p734_p7 = pnand %p421_p2, %p929_p0  ;;  %p741_p3 = pnand %p434_p4, %p703_p5 }
  0x19   : > { %s411_s29 = smul.u32 48, %s121_s27  ;;  %p512_p8 = scmp.ne.s32.totalorder %s917_s1, %s511_s4 }
  0x1a   : > { %s931_s28 = scalar_select %p741_p3, 1, 0 }
  0x1b   : > { %p513_p9 = pneg %p734_p7  ;;  %p518_p4 = scmp.lt.u32.totalorder %s511_s4, %s917_s1 }
  0x1d   : > { %p514_p10 = pnand %p513_p9, %p512_p8 }
  0x1f   : > { %p515_p2 = pneg %p514_p10 }
  0x21   : > { %p520_p5 = pnand %p518_p4, %p515_p2 }
  0x23   : > { %523 = shalt.err (!%p520_p5)
}
  0x24   : > { %s524_s14 = scalar_lea.vmem %s111_s25, 256  ;;  %p532_p11 = scmp.lt.s32.totalorder %s111_s25, %s111_s25 }
  0x25   : > { %p525_p0 = scmp.ne.s32.totalorder %s111_s25, %s524_s14  ;;  %p533_p6 = scmp.lt.s32.totalorder %s524_s14, %s524_s14 }
  0x27   : > { %p527_p1 = pnand %p525_p0, %p513_p9  ;;  %p534_p13 = por %p533_p6, %p532_p11 }
  0x29   : > { %p528_p12 = pneg %p527_p1 }
  0x2b   : > { %p535_p3 = pnand %p534_p13, %p528_p12 }
  0x2d   : > { %538 = shalt.err (!%p535_p3)
}
  0x2e   : > { %424 = dma.hbm_to_vmem [thread:$0]  (!%p734_p7), %s917_s1, 256, %s111_s25, [#allocation6]  }
  0x2f   : > { %s409_s19 = smul.u32 768, %s639_s12  ;;  %s125_s24 = scalar_lea.vmem [#allocation2], %s411_s29 }
  0x30   : > { %s133_s30 = sshll.u32 %s125_s24, 4  ;;  %s769_s26 = scalar_lea.sflag [#allocation3], %s121_s27  ;;  %s762_s30 = int_to_ptr.vmem [resolvable:$true] %s133_s30 }
  0x31   : > { %s767_s5 = scalar_lea.hbm %s916_s0, %s409_s19  ;;  %p932_p11 = scmp.ne.s32.totalorder %s931_s28, 0 }
  0x32   : > { %s539_s6 = scalar_lea.hbm %s767_s5, 768  ;;  %s544_s7 = scalar_lea.hbm %s916_s0, 1536 }
  0x33   : > { %p540_p6 = scmp.ne.s32.totalorder %s767_s5, %s539_s6  ;;  %p541_p12 = pneg %p932_p11 }
  0x34   : > { %p545_p7 = scmp.lt.u32.totalorder %s767_s5, %s916_s0  ;;  %p546_p3 = scmp.lt.u32.totalorder %s544_s7, %s539_s6 }
  0x35   : > { %p542_p13 = pnand %p541_p12, %p540_p6  ;;  %p548_p9 = scmp.lt.u32.totalorder %s539_s6, %s767_s5 }
  0x36   : > { %p547_p8 = por %p546_p3, %p545_p7 }
  0x37   : > { %p543_p1 = pneg %p542_p13 }
  0x38   : > { %p549_p10 = por %p548_p9, %p547_p8 }
  0x3a   : > { %p550_p2 = pnand %p549_p10, %p543_p1 }
  0x3c   : > { %553 = shalt.err (!%p550_p2)
}
  0x3d   : > { %s554_s27 = scalar_lea.vmem %s762_s30, 768  ;;  %s642_s16 = smov [#allocation2]  }
  0x3e   : > { %p555_p4 = scmp.ne.s32.totalorder %s762_s30, %s554_s27  ;;  %s559_s17 = sshll.u32 %s642_s16, 4  ;;  %s560_s17 = int_to_ptr.vmem [resolvable:$false] %s559_s17 }
  0x3f   : > { %s561_s19 = scalar_lea.vmem %s560_s17, 1536  ;;  %p562_p6 = scmp.lt.s32.totalorder %s762_s30, %s560_s17 }
  0x40   : > { %p557_p5 = pnand %p555_p4, %p541_p12  ;;  %p563_p13 = scmp.lt.s32.totalorder %s561_s19, %s554_s27 }
  0x42   : > { %p558_p0 = pneg %p557_p5  ;;  %p564_p7 = por %p563_p13, %p562_p6 }
  0x44   : > { %p565_p3 = pnand %p564_p7, %p558_p0 }
  0x46   : > { %568 = shalt.err (!%p565_p3)
}
  0x47   : > { %s643_s24 = smov 256   ;;  %s644_s3 = smov 16  }
  0x48   : > { %428 = dma.hbm_to_vmem [thread:$0]  (!%p932_p11), %s767_s5, 768, %s762_s30, %s769_s26, %s643_s24, %s643_s24, %s644_s3  }
  0x49   : > { %p933_p12 = scmp.ne.s32.totalorder %s928_s23, 0 }
  0x4a   : > { %s800_s4 = sand.u32 (!%p933_p12), 1, %s631_s10   ;;  %p934_p1 = scmp.ne.s32.totalorder (!%p933_p12), %s925_s20, 0 }
  0x4b   : > { %145 = sbr.rel (%p933_p12) target bundleno = 142 (0x8e), region = 28  ;;  %s148_s25 = scalar_lea.sflag (!%p933_p12), [#allocation3], %s800_s4 }
  0x4c   : > { %s412_s6 = smul.u32 (!%p933_p12), 48, %s800_s4 }
  0x4e   : > { %s151_s29 = scalar_lea.vmem (!%p933_p12), [#allocation2], %s412_s6 }
  0x52   : > { %614 = dma.done.wait (%p934_p1), %s148_s25, 768  }
  0x53   : > { %616 = vsyncadd (%p934_p1), %s148_s25, 4294966528  ;;  %p935_p11 = scmp.eq.s32.totalorder %s685_s13, 0 }
  0x55   : > { %618 = dma.done.wait (%p935_p11), [#allocation6], 256   ;;  %p936_p8 = pmov %p935_p11 }
  0x56   : > { %v187_v0 = vld [vmem:[%s151_s29] sm:$0xff]  ;;  %v188_v2 = vld [vmem:[%s151_s29 + $0x8] sm:$0xff]  ;;  %v389_v4 = vld [vmem:[%s151_s29 + $0x10] sm:$0xff]  ;;  %v180_v10 = vlaneseq  ;;  %v645_v24 = vmov 1.0   ;;  %s175_s20 = scalar_lea.vmem [#allocation7], %s412_s6  ;;  %s410_s28 = smul.u32 768, %s685_s13 }
  0x57   : > { %620 = vsyncadd (%p936_p8), [#allocation6], 4294967040  ;;  %v387_v1 = vmul.f32 -1.442695, %v187_v0  ;;  %v388_v3 = vmul.f32 -1.442695, %v188_v2 }
  0x58   : > { %v390_v5 = vld [vmem:[%s151_s29 + $0x18] sm:$0xff]  ;;  %v391_v6 = vmul.f32 -1.442695, %v389_v4  ;;  %v395_v7 = vld [vmem:[%s151_s29 + $0x20] sm:$0xff]  ;;  %v396_v9 = vld [vmem:[%s151_s29 + $0x28] sm:$0xff]  ;;  %v814_v14 = vshrl.u32 %v180_v10, 7  ;;  %s872_s26 = scalar_lea.hbm %s918_s2, %s410_s28 }
  0x59   : > { %475 = vpow2.f32 %v387_v1  ;;  %v392_v8 = vmul.f32 -1.442695, %v390_v5  ;;  %v397_v11 = vmul.f32 -1.442695, %v395_v7  ;;  %v398_v12 = vmul.f32 -1.442695, %v396_v9 }
  0x5a   : > { %477 = vpow2.f32 %v388_v3  ;;  %v189_v13 = vmul.f32 1.442695, %v187_v0  ;;  %v191_v15 = vmul.f32 1.442695, %v188_v2  ;;  %v220_v17 = vmul.f32 1.442695, %v389_v4 }
  0x5b   : > { %479 = vpow2.f32 %v391_v6  ;;  %vm185_vm0 = vcmp.eq.s32.totalorder %v814_v14, 3  ;;  %v222_v20 = vmul.f32 1.442695, %v390_v5  ;;  %v252_v23 = vmul.f32 1.442695, %v395_v7  ;;  %v178_v40 = vld [vmem:[#allocation5] sm:$0xff] }
  0x5c   : > { %481 = vpow2.f32 %v392_v8  ;;  %vm184_vm1 = vcmp.eq.s32.totalorder %v814_v14, 2  ;;  %v207_v25 = vsel %vm185_vm0, 13.0, %v645_v24  ;;  %v254_v28 = vmul.f32 1.442695, %v396_v9  ;;  %v179_v47 = vld [vmem:[#allocation5 + $0x8] sm:$0xff]  ;;  %s296_s23 = sshll.u32 %s175_s20, 4  ;;  %s867_s23 = int_to_ptr.vmem [resolvable:$true] %s296_s23 }
  0x5d   : > { %483 = vpow2.f32 %v397_v11  ;;  %vm183_vm2 = vcmp.eq.s32.totalorder %v814_v14, 1  ;;  %v208_v31 = vsel %vm184_vm1, 10.0, %v207_v25  ;;  %v238_v32 = vsel %vm185_vm0, 30.0, %v645_v24  ;;  %vm830_vm4 = vmor %vm184_vm1, %vm185_vm0  ;;  %s282_s13 = scalar_lea.sflag [#allocation4], %s800_s4  ;;  %s569_s7 = scalar_lea.vmem %s867_s23, 768 }
  0x5e   : > { %485 = vpow2.f32 %v398_v12  ;;  %vm182_vm3 = vcmp.eq.s32.totalorder %v814_v14, 0  ;;  %v209_v37 = vsel %vm183_vm2, 4.0, %v208_v31  ;;  %v239_v41 = vsel %vm184_vm1, 16.0, %v238_v32  ;;  %p570_p9 = scmp.ne.s32.totalorder %s867_s23, %s569_s7  ;;  %p939_p10 = scmp.ne.s32.totalorder %s926_s21, 0 }
  0x5f   : > { %487 = vpow2.f32 %v189_v13  ;;  %v270_v43 = vsel %vm185_vm0, 23.0, %v645_v24  ;;  %v210_v46 = vsel %vm182_vm3, 4.0, %v209_v37  ;;  %v240_v50 = vsel %vm183_vm2, 4.0, %v239_v41  ;;  %s646_s8 = smov [#allocation7]  }
  0x60   : > { %489 = vpow2.f32 %v191_v15  ;;  %v271_v53 = vsel %vm184_vm1, 33.0, %v270_v43  ;;  %v241_v59 = vsel %vm182_vm3, 4.0, %v240_v50  ;;  %p571_p2 = pnand %p570_p9, %p939_p10  ;;  %s573_s14 = sshll.u32 %s646_s8, 4  ;;  %s574_s14 = int_to_ptr.vmem [resolvable:$false] %s573_s14 }
  0x61   : > { %v272_v63 = vsel %vm183_vm2, 4.0, %v271_v53  ;;  %s575_s27 = scalar_lea.vmem %s574_s14, 1536  ;;  %p576_p5 = scmp.lt.s32.totalorder %s867_s23, %s574_s14 }
  0x62   : > { %v273_v6 = vsel %vm182_vm3, 4.0, %v272_v63  ;;  %p572_p4 = pneg %p571_p2  ;;  %p577_p0 = scmp.lt.s32.totalorder %s575_s27, %s569_s7 }
  0x63   : > { %v476_v16 = vpop.eup %475 }
  0x64   : > { %v199_v18 = vadd.f32 1.0, %v476_v16  ;;  %v478_v19 = vpop.eup %477  ;;  %p578_p6 = por %p577_p0, %p576_p5 }
  0x65   : > { %v200_v21 = vadd.f32 1.0, %v478_v19  ;;  %v480_v22 = vpop.eup %479 }
  0x66   : > { %491 = vrcp.f32 %v199_v18  ;;  %v230_v26 = vadd.f32 1.0, %v480_v22  ;;  %v482_v27 = vpop.eup %481  ;;  %p579_p13 = pnand %p578_p6, %p572_p4 }
  0x67   : > { %493 = vpow2.f32 %v220_v17  ;;  %v231_v29 = vadd.f32 1.0, %v482_v27  ;;  %v484_v30 = vpop.eup %483 }
  0x68   : > { %495 = vrcp.f32 %v200_v21  ;;  %v262_v33 = vadd.f32 1.0, %v484_v30  ;;  %v486_v34 = vpop.eup %485 }
  0x69   : > { %497 = vpow2.f32 %v222_v20  ;;  %v488_v35 = vpop.eup %487  ;;  %v263_v38 = vadd.f32 1.0, %v486_v34 }
  0x6a   : > { %499 = vrcp.f32 %v230_v26  ;;  %v490_v39 = vpop.eup %489 }
  0x6b   : > { %501 = vpow2.f32 %v252_v23 }
  0x6c   : > { %503 = vrcp.f32 %v231_v29 }
  0x6d   : > { %505 = vpow2.f32 %v254_v28 }
  0x6e   : > { %507 = vrcp.f32 %v262_v33 }
  0x6f   : > { %509 = vrcp.f32 %v263_v38 }
  0x70   : > { %v492_v42 = vpop.eup %491 }
  0x71   : > { %v494_v44 = vpop.eup %493  ;;  %v205_v45 = vsel %vm830_vm4, %v488_v35, %v492_v42 }
  0x72   : > { %v496_v48 = vpop.eup %495  ;;  %v211_v49 = vadd.f32 %v205_v45, %v178_v40 }
  0x73   : > { %v498_v51 = vpop.eup %497  ;;  %v206_v52 = vsel %vm830_vm4, %v490_v39, %v496_v48 }
  0x74   : > { %v500_v54 = vpop.eup %499  ;;  %v213_v55 = vmul.f32 %v211_v49, %v210_v46  ;;  %v212_v56 = vadd.f32 %v206_v52, %v179_v47 }
  0x75   : > { %v502_v57 = vpop.eup %501  ;;  %v236_v58 = vsel %vm830_vm4, %v494_v44, %v500_v54 }
  0x76   : > { %v504_v60 = vpop.eup %503  ;;  %215 = vst [vmem:[%s175_s20] sm:$0xff] %v213_v55  ;;  %v214_v61 = vmul.f32 %v212_v56, %v210_v46  ;;  %v242_v62 = vadd.f32 %v236_v58, %v178_v40 }
  0x77   : > { %v506_v0 = vpop.eup %505  ;;  %v237_v1 = vsel %vm830_vm4, %v498_v51, %v504_v60 }
  0x78   : > { %v508_v2 = vpop.eup %507  ;;  %216 = vst [vmem:[%s175_s20 + $0x8] sm:$0xff] %v214_v61  ;;  %v244_v3 = vmul.f32 %v242_v62, %v241_v59  ;;  %v243_v4 = vadd.f32 %v237_v1, %v179_v47 }
  0x79   : > { %v268_v5 = vsel %vm830_vm4, %v502_v57, %v508_v2  ;;  %v510_v7 = vpop.eup %509 }
  0x7a   : > { %393 = vst [vmem:[%s175_s20 + $0x10] sm:$0xff] %v244_v3  ;;  %v245_v8 = vmul.f32 %v243_v4, %v241_v59  ;;  %v274_v9 = vadd.f32 %v268_v5, %v178_v40  ;;  %v269_v10 = vsel %vm830_vm4, %v506_v0, %v510_v7 }
  0x7b   : > { %v275_v12 = vadd.f32 %v269_v10, %v179_v47 }
  0x7c   : > { %394 = vst [vmem:[%s175_s20 + $0x18] sm:$0xff] %v245_v8  ;;  %v276_v11 = vmul.f32 %v274_v9, %v273_v6 }
  0x7d   : > { %v277_v13 = vmul.f32 %v275_v12, %v273_v6 }
  0x7e   : > { %399 = vst [vmem:[%s175_s20 + $0x20] sm:$0xff] %v276_v11 }
  0x7f   : > { %400 = vst [vmem:[%s175_s20 + $0x28] sm:$0xff] %v277_v13 }
  0x80   : > { %582 = shalt.err (!%p579_p13)
}
  0x81   : > { %s583_s16 = scalar_lea.hbm %s872_s26, 768  ;;  %s587_s24 = scalar_lea.hbm %s918_s2, 1536 }
  0x82   : > { %p584_p7 = scmp.ne.s32.totalorder %s872_s26, %s583_s16  ;;  %p588_p1 = scmp.lt.u32.totalorder %s872_s26, %s918_s2 }
  0x83   : > { %p589_p11 = scmp.lt.u32.totalorder %s587_s24, %s583_s16  ;;  %p591_p9 = scmp.lt.u32.totalorder %s583_s16, %s872_s26 }
  0x84   : > { %p585_p3 = pnand %p584_p7, %p939_p10 }
  0x85   : > { %p590_p8 = por %p589_p11, %p588_p1 }
  0x86   : > { %p586_p12 = pneg %p585_p3 }
  0x87   : > { %p592_p2 = por %p591_p9, %p590_p8 }
  0x89   : > { %p593_p4 = pnand %p592_p2, %p586_p12 }
  0x8b   : > { %596 = shalt.err (!%p593_p4)
}
  0x8c   : > { %s647_s25 = smov 256   ;;  %s648_s29 = smov 16  }
  0x8d   : > { %419 = dma.vmem_to_hbm [thread:$0]  (%p939_p10), %s867_s23, 768, %s872_s26, %s282_s13, %s647_s25, %s647_s25, %s648_s29  }
  0x8e PF: > { %s311_s20 = sand.u32 1, %s627_s9   ;;  %p940_p5 = scmp.ne.s32.totalorder %s927_s22, 0 }
  0x8f   : > { %p941_p0 = scmp.ge.s32.totalorder %s639_s12, 2  ;;  %s312_s28 = scalar_lea.sflag [#allocation4], %s311_s20 }
  0x91   : > { %p430_p6 = pnand %p941_p0, %p940_p5 }
  0x93   : > { %622 = dma.done.wait (!%p430_p6), %s312_s28, 768  }
  0x94   : > { %624 = vsyncadd (!%p430_p6), %s312_s28, 4294966528  ;;  %p16_p13 = scmp.ge.s32.totalorder %s689_s15, 4   ;;  %s942_s9 = smov %s631_s10 }
  0x95   : > { %s943_s10 = smov %s635_s11  ;;  %s944_s11 = smov %s701_s18 }
  0x96   : > { %s945_s12 = smov %s689_s15  ;;  %18 = sbr.rel (!%p16_p13) target bundleno = 6 (0x6), region = 81 }
  0x9d   :  { %317 = vsyncpa [#allocation3], 1 }
  0x9e   :  { %319 = vsyncpa [#allocation3 + $0x1], 1 }
  0x9f   :  { %320 = vsyncpa [#allocation6], 1 }
  0xa0   :  { %321 = vsyncpa [#allocation4], 1 }
  0xa1   :  { %323 = vsyncpa [#allocation4 + $0x1], 1 }

</bundles_post_ra>
